<compile_context>
chip_gen: v6e
topology: v6e:2x2x1
jax: 0.10.0
libtpu: 0.0.40
codegen_flags: <defaults>
</compile_context>

<pallas_src>
import numpy as np
from collections import Counter

import jax
import jax.numpy as jnp
from jax.experimental import pallas as pl
from jax.experimental.pallas import tpu as pltpu


def count_dataset(labels):
    # Faithful port of the PyTorch helper (Counter keys iterate in first-appearance order).
    result_count = Counter(labels)
    base_probs = []
    for i in result_count.keys():
        base_probs.append(result_count[i] / len(labels))
    return base_probs


def la_loss_kernel(logits_ref, logprior_ref, target_ref, loss_ref):
    """Per-example logit-adjusted cross-entropy for one batch tile.

    logits_ref  : (TB, C) native dtype (f32 / bf16) VMEM  -- streamed batch tile
    logprior_ref: (1, C)  f32 VMEM                        -- log(base_probs**tau + 1e-12)
    target_ref  : (TB, 1) i32 VMEM                        -- class indices
    loss_ref    : (TB, 1) f32 VMEM                        -- per-example NLL (partial output)
    """
    # Upcast in-register so HBM traffic stays at the native input width.
    adj = logits_ref[...].astype(jnp.float32) + logprior_ref[...]
    # Numerically-stable log-sum-exp per row.
    m = jnp.max(adj, axis=-1, keepdims=True)
    lse = m + jnp.log(jnp.sum(jnp.exp(adj - m), axis=-1, keepdims=True))
    # Gather the adjusted logit of the target class via a masked select
    # (cheaper than one-hot convert + multiply on the VALU).
    cls_ids = jax.lax.broadcasted_iota(jnp.int32, adj.shape, 1)
    correct = jnp.sum(jnp.where(cls_ids == target_ref[...], adj, 0.0),
                      axis=-1, keepdims=True)
    loss_ref[...] = lse - correct


def _choose_batch_tile(B, C, itemsize):
    # Largest multiple of 8 whose double-buffered logits tile stays well inside the
    # scoped-VMEM budget on every generation (v5e 16 MiB default .. v7x 64 MiB physical).
    logits_budget = 8 * 1024 * 1024            # bytes for 2 x (TB, C) logits buffers
    tb = logits_budget // max(1, 2 * C * itemsize)
    tb = max(8, min(1024, (tb // 8) * 8))
    b_pad8 = ((B + 7) // 8) * 8                # don't tile bigger than the (padded) batch
    return min(tb, b_pad8)


def la_loss(logits, target, base_probs, tau=1.0):
    B, C = logits.shape
    log_prior = jnp.log(
        jnp.asarray(np.array(base_probs, dtype=np.float64) ** tau + 1e-12,
                    dtype=jnp.float32)
    ).reshape(1, C)

    TB = _choose_batch_tile(B, C, logits.dtype.itemsize)
    num_tiles = pl.cdiv(B, TB)
    B_pad = num_tiles * TB

    # Pad the batch so every grid step sees a full (TB, C) tile; padded rows are
    # sliced off before the mean, so their values never affect the loss.
    if B_pad != B:
        logits = jnp.pad(logits, ((0, B_pad - B), (0, 0)))
        target = jnp.pad(target, (0, B_pad - B))
    target2d = target.astype(jnp.int32).reshape(B_pad, 1)

    # TODO(synk): for vocab-scale C (>= ~16k classes) add a second, "arbitrary" grid
    # axis over classes with an online (flash-style) LSE instead of a full-C block.
    per_example = pl.pallas_call(
        la_loss_kernel,
        out_shape=jax.ShapeDtypeStruct((B_pad, 1), jnp.float32),
        grid=(num_tiles,),
        in_specs=[
            pl.BlockSpec((TB, C), lambda i: (i, 0)),   # logits tile (streamed / pipelined)
            pl.BlockSpec((1, C), lambda i: (0, 0)),    # log prior (same block every step)
            pl.BlockSpec((TB, 1), lambda i: (i, 0)),   # targets tile
        ],
        out_specs=pl.BlockSpec((TB, 1), lambda i: (i, 0)),
        compiler_params=pltpu.CompilerParams(
            # Per-tile independent outputs -> safe to shard the batch axis across
            # TensorCores (2x on v7x, no-op on v5e/v6e).
            dimension_semantics=("parallel",),
            vmem_limit_bytes=32 * 1024 * 1024,
        ),
    )(logits, log_prior, target2d)

    # Mean reduction over the true batch (F.cross_entropy default), done in the wrapper
    # so the kernel needs no serial scalar accumulator.
    return jnp.sum(per_example[:B, 0]) / jnp.float32(B)


if __name__ == "__main__":
    B, C = 8, 16

    # Deterministic synthetic "dataset labels" used to build the class priors.
    # Class c appears (c + 1) times; first appearance is in class-index order,
    # so base_probs[i] corresponds to class i (matching the module's implicit assumption).
    dataset_labels = []
    for c in range(C):
        dataset_labels.extend([c] * (c + 1))
    base_probs = count_dataset(dataset_labels)

    key = jax.random.PRNGKey(0)
    k_logits, k_target = jax.random.split(key)
    logits = jax.random.normal(k_logits, (B, C), dtype=jnp.float32)
    target = jax.random.randint(k_target, (B,), 0, C, dtype=jnp.int32)

    loss = la_loss(logits, target, base_probs, tau=1.0)
    jax.block_until_ready(loss)

    # Pure-JAX reference check (same math, outside Pallas).
    log_prior = jnp.log(jnp.asarray(np.array(base_probs) ** 1.0 + 1e-12, dtype=jnp.float32))
    adj = logits + log_prior[None, :]
    ref = jnp.mean(
        jax.nn.logsumexp(adj, axis=-1) - jnp.take_along_axis(adj, target[:, None], axis=-1)[:, 0]
    )
    assert jnp.allclose(loss, ref, atol=1e-5, rtol=1e-5), (loss, ref)

    print("KERNEL_OK")
</pallas_src>

<mosaic_0001>
module attributes {stable_mosaic.version = 11 : i64} {
  func.func @la_loss_kernel(%arg0: i32, %arg1: memref<8x16xf32, #tpu.memory_space<vmem>>, %arg2: memref<1x16xf32, #tpu.memory_space<vmem>>, %arg3: memref<8x1xi32, #tpu.memory_space<vmem>>, %arg4: memref<8x1xf32, #tpu.memory_space<vmem>>) attributes {dimension_semantics = [#tpu.dimension_semantics<parallel>], iteration_bounds = array<i64: 1>, scalar_prefetch = 0 : i64, scratch_operands = 0 : i64, tpu.core_type = #tpu.core_type<tc>, window_params = [{transform_indices = @transform_0, window_bounds = array<i64: 8, 16>}, {pipeline_mode = #tpu.pipeline_mode<synchronous>, transform_indices = @transform_1, window_bounds = array<i64: 1, 16>}, {transform_indices = @transform_2, window_bounds = array<i64: 8, 1>}, {transform_indices = @transform_3, window_bounds = array<i64: 8, 1>}]} {
    %c0 = arith.constant 0 : index
    %c0_0 = arith.constant 0 : index
    %0 = vector.load %arg1[%c0, %c0_0] : memref<8x16xf32, #tpu.memory_space<vmem>>, vector<8x16xf32>
    %c0_1 = arith.constant 0 : index
    %c0_2 = arith.constant 0 : index
    %1 = vector.load %arg2[%c0_1, %c0_2] : memref<1x16xf32, #tpu.memory_space<vmem>>, vector<1x16xf32>
    %2 = vector.broadcast %1 : vector<1x16xf32> to vector<8x16xf32>
    %3 = arith.addf %0, %2 : vector<8x16xf32>
    %cst = arith.constant dense<0xFF800000> : vector<8xf32>
    %4 = vector.multi_reduction <maximumf>, %3, %cst [1] : vector<8x16xf32> to vector<8xf32>
    %5 = vector.shape_cast %4 : vector<8xf32> to vector<8x1xf32>
    %6 = vector.broadcast %5 : vector<8x1xf32> to vector<8x16xf32>
    %7 = arith.subf %3, %6 : vector<8x16xf32>
    %8 = math.exp %7 : vector<8x16xf32>
    %cst_3 = arith.constant dense<0.000000e+00> : vector<8xf32>
    %9 = vector.multi_reduction <add>, %8, %cst_3 [1] : vector<8x16xf32> to vector<8xf32>
    %10 = vector.shape_cast %9 : vector<8xf32> to vector<8x1xf32>
    %11 = math.log %10 : vector<8x1xf32>
    %12 = arith.addf %5, %11 : vector<8x1xf32>
    %13 = tpu.iota {dimensions = array<i32: 1>} : vector<8x16xi32>
    %c0_4 = arith.constant 0 : index
    %c0_5 = arith.constant 0 : index
    %14 = vector.load %arg3[%c0_4, %c0_5] : memref<8x1xi32, #tpu.memory_space<vmem>>, vector<8x1xi32>
    %15 = vector.broadcast %14 : vector<8x1xi32> to vector<8x16xi32>
    %16 = arith.cmpi eq, %13, %15 : vector<8x16xi32>
    %cst_6 = arith.constant 0.000000e+00 : f32
    %17 = vector.broadcast %cst_6 : f32 to vector<8x16xf32>
    %18 = arith.select %16, %3, %17 : vector<8x16xi1>, vector<8x16xf32>
    %cst_7 = arith.constant dense<0.000000e+00> : vector<8xf32>
    %19 = vector.multi_reduction <add>, %18, %cst_7 [1] : vector<8x16xf32> to vector<8xf32>
    %20 = vector.shape_cast %19 : vector<8xf32> to vector<8x1xf32>
    %21 = arith.subf %12, %20 : vector<8x1xf32>
    %c0_8 = arith.constant 0 : index
    %c0_9 = arith.constant 0 : index
    %22 = vector.load %arg4[%c0_8, %c0_9] : memref<8x1xf32, #tpu.memory_space<vmem>>, vector<8x1xf32>
    tpu.vector_store %arg4[%c0_8, %c0_9], %21 {strides = array<i32>} : memref<8x1xf32, #tpu.memory_space<vmem>>, vector<8x1xf32>,
    return
  }
  func.func @transform_0(%arg0: i32) -> (i32, i32) {
    %c0_i32 = arith.constant 0 : i32
    %c0_i32_0 = arith.constant 0 : i32
    return %arg0, %c0_i32 : i32, i32
  }
  func.func @transform_1(%arg0: i32) -> (i32, i32) {
    %c0_i32 = arith.constant 0 : i32
    %c0_i32_0 = arith.constant 0 : i32
    %c0_i32_1 = arith.constant 0 : i32
    return %c0_i32, %c0_i32_0 : i32, i32
  }
  func.func @transform_2(%arg0: i32) -> (i32, i32) {
    %c0_i32 = arith.constant 0 : i32
    %c0_i32_0 = arith.constant 0 : i32
    return %arg0, %c0_i32 : i32, i32
  }
  func.func @transform_3(%arg0: i32) -> (i32, i32) {
    %c0_i32 = arith.constant 0 : i32
    %c0_i32_0 = arith.constant 0 : i32
    return %arg0, %c0_i32 : i32, i32
  }
}

</mosaic_0001>

<bundles_post_ra>
// kernel: tpu_custom_call.1
= control target key start
LH: loop header
LB: loop body
LE: loop exit
PB: predicated region body
PF: predicated region fallthrough
CT: control target
= control target key end

     0   :  { %vm23_vm0 = vcmask 130048   ;;  %v61_v2 = vmov 0   ;;  %v36_v9 = vlaneseq  ;;  %vm48_vm2 = vcmask 7168   ;;  %s97_s0 = inlined_call_operand.vmem [shape: f32[8,16], index: 0, kind: input, shape index: {}]   ;;  %s98_s1 = inlined_call_operand.vmem [shape: f32[1,16], index: 1, kind: input, shape index: {}]   ;;  %s99_s2 = inlined_call_operand.vmem [shape: s32[8,1], index: 2, kind: input, shape index: {}]   ;;  %s100_s3 = inlined_call_operand.vmem [shape: f32[8,1], index: 3, kind: output, shape index: {}]  }
   0x1   :  { %v14_v0 = vld [vmem:[%s97_s0] sm:$0xff]  ;;  %56 = vset.pattern.permute.xlu0 %v61_v2 }
   0x2   :  { %v54_v1 = vld [vmem:[%s98_s1] ss:$0 sm:$0xff]  ;;  %v37_v10 = vand.u32 127, %v36_v9 }
   0x3   :  { %v22_v3 = vadd.f32 %v54_v1, %v14_v0  ;;  %v38_v5 = vld [vmem:[%s99_s2] sm:$0xff] }
   0x5   :  { %v24_v4 = vsel %vm23_vm0, %v22_v3, -inf }
   0x6   :  { %25 = vmax.xlane.f32.xlu0 %v24_v4 }
  0x1c   :  { %40 = vperm.xlu0 %56, %v38_v5  }
  0x8f   :  { %v26_v6 = vpop.xlane.xlu0 %25 }
  0x90   :  { %v27_v7 = vsub.f32 %v22_v3, %v26_v6 }
  0x92   :  { %v28_v8 = vmul.f32 1.442695, %v27_v7 }
  0x94   :  { %57 = vpow2.f32 %v28_v8 }
  0x97   :  { %v41_v11 = vpop.permute.xlu0 %40 }
  0x98   :  { %vm42_vm1 = vcmp.eq.s32.totalorder %v37_v10, %v41_v11 }
  0x99   :  { %v43_v13 = vsel %vm42_vm1, %v22_v3, 0.0 }
  0x9a   :  { %v44_v15 = vsel %vm23_vm0, %v43_v13, 0.0 }
  0xa1   :  { %v58_v12 = vpop.eup %57 }
  0xa2   :  { %v30_v14 = vsel %vm23_vm0, %v58_v12, 0.0 }
  0xa3   :  { %31 = vadd.xlane.f32.xlu1 %v30_v14 }
  0xa7   :  { %45 = vadd.xlane.f32.xlu1 %v44_v15 }
 0x12c   :  { %v32_v16 = vpop.xlane.xlu1 %31 }
 0x12d   :  { %59 = vlog2.f32 %v32_v16 }
 0x130   :  { %v46_v19 = vpop.xlane.xlu1 %45 }
 0x13a   :  { %v60_v17 = vpop.eup %59 }
 0x13b   :  { %v34_v18 = vmul.f32 0.6931472, %v60_v17 }
 0x13d   :  { %v35_v20 = vadd.f32 %v34_v18, %v26_v6 }
 0x13f   :  { %v47_v21 = vsub.f32 %v35_v20, %v46_v19 }
 0x141   :  { %49 = vst.msk [vmem:[%s100_s3] sm:$0xff] %vm48_vm2, %v47_v21 }

</bundles_post_ra>
